<compile_context>
chip_gen: v7x
topology: tpu7x:2x2x1
jax: 0.10.0
libtpu: 0.0.40
codegen_flags: <defaults>
</compile_context>

<pallas_src>
import functools

import jax
import jax.numpy as jnp
from jax import lax
from jax.experimental import pallas as pl
from jax.experimental.pallas import tpu as pltpu


# ---------------------------------------------------------------------------
# Kernel: one (bm, bn) tile of scores = matmul + hinge + diag/pad mask + reduce
# ---------------------------------------------------------------------------
def _loss_kernel(im_ref, s_ref, dcol_ref, drow_ref, out_ref, *, margin, bm, bn, n):
    i = pl.program_id(0)
    j = pl.program_id(1)

    # Per-row-block partial is resident across the j (reduction) axis: init once.
    @pl.when(j == 0)
    def _init():
        out_ref[...] = jnp.zeros_like(out_ref)

    # scores tile = im_i (bm, D) @ s_j (bn, D)^T -> (bm, bn), f32 MXU accumulation.
    scores = lax.dot_general(
        im_ref[...], s_ref[...],
        dimension_numbers=(((1,), (1,)), ((), ())),
        preferred_element_type=jnp.float32)

    m = jnp.float32(margin)
    # cost_s broadcasts diag over the *column* index, cost_im over the *row* index.
    cost_s = jnp.maximum(0.0, (m - dcol_ref[...]) + scores)   # (1, bn) over rows
    cost_im = jnp.maximum(0.0, (m - drow_ref[...]) + scores)  # (bm, 1) over cols
    total = cost_s + cost_im

    # Zero the global diagonal; padding compares only when the batch is ragged
    # (static check), so aligned shapes skip them entirely.
    rows = i * bm + lax.broadcasted_iota(jnp.int32, (bm, 1), 0)
    cols = j * bn + lax.broadcasted_iota(jnp.int32, (1, bn), 1)
    keep = rows != cols
    if n % bm != 0:
        keep = keep & (rows < n)
    if n % bn != 0:
        keep = keep & (cols < n)
    total = jnp.where(keep, total, 0.0)   # select: padded garbage cannot leak

    # Lane-axis then sublane-axis reduce -> (1, 1); accumulate across j.
    part = jnp.sum(jnp.sum(total, axis=1, keepdims=True), axis=0, keepdims=True)
    out_ref[...] += part                   # broadcasts over the (1, 8, 128) block


# ---------------------------------------------------------------------------
# Wrapper
# ---------------------------------------------------------------------------
def pairwise_ranking_loss(im, s, margin=1.0, block=512,
                          matmul_dtype=jnp.bfloat16,
                          resident_bytes=4 * 2**20, max_resident_n=2048):
    """im, s: (N, D) embeddings -> scalar VSE pairwise ranking loss."""
    n, d = im.shape
    assert s.shape == (n, d)
    im = im.astype(jnp.float32)
    s = s.astype(jnp.float32)

    # diag[k] = <im[k], s[k]> in f32; XLA fuses the mul+reduce (no extra kernel).
    diag = jnp.sum(im * s, axis=1)
    diag_col = diag.reshape(1, n)          # lane-dense, broadcast over rows
    diag_row = diag.reshape(n, 1)          # broadcast over columns

    op_bytes = jnp.dtype(matmul_dtype).itemsize
    im_op = im.astype(matmul_dtype)
    s_op = s.astype(matmul_dtype)

    # --- block sizing ------------------------------------------------------
    if n <= block:
        bm = n
    else:
        bm = block
        # keep the double-buffered (bm, D) operand blocks bounded for huge D
        while bm > 128 and 2 * bm * d * op_bytes > 16 * 2**20:
            bm //= 2
    # s fully VMEM-resident (single column block) whenever it comfortably fits;
    # otherwise tile columns like rows.
    if n * d * op_bytes <= resident_bytes and n <= max_resident_n:
        bn = n
    else:
        bn = bm
    ni = pl.cdiv(n, bm)
    nj = pl.cdiv(n, bn)

    # Explicit scoped-VMEM budget: operand blocks (double-buffered) + diag blocks
    # + scores/hinge/mask intermediates, clamped to [32 MiB, 56 MiB] so it covers
    # v5e's 16 MiB scoped default while staying under v7x's 64 MiB physical.
    vmem_est = (2 * (bm + bn) * d * op_bytes
                + 2 * (bm + bn) * 4
                + 6 * bm * bn * 4)
    vmem_limit = int(min(56 * 2**20, max(32 * 2**20, vmem_est + 8 * 2**20)))

    partials = pl.pallas_call(
        functools.partial(_loss_kernel, margin=float(margin), bm=bm, bn=bn, n=n),
        out_shape=jax.ShapeDtypeStruct((ni, 8, 128), jnp.float32),
        grid=(ni, nj),
        in_specs=[pl.BlockSpec((bm, d), lambda i, j: (i, 0)),
                  pl.BlockSpec((bn, d), lambda i, j: (j, 0)),
                  pl.BlockSpec((1, bn), lambda i, j: (0, j)),
                  pl.BlockSpec((bm, 1), lambda i, j: (i, 0))],
        out_specs=pl.BlockSpec((1, 8, 128), lambda i, j: (i, 0, 0)),
        compiler_params=pltpu.CompilerParams(
            dimension_semantics=("parallel", "arbitrary"),
            vmem_limit_bytes=vmem_limit),
    )(im_op, s_op, diag_col, diag_row)

    # Every element of partials[i] holds the i-th row-block total.
    return jnp.sum(partials[:, 0, 0])


# ---------------------------------------------------------------------------
# Pure-JAX reference (mirrors the PyTorch forward exactly, f32 throughout)
# ---------------------------------------------------------------------------
def pairwise_ranking_loss_ref(im, s, margin=1.0):
    scores = im @ s.T
    diag = jnp.diag(scores)
    cost_s = jnp.maximum(0.0, (margin - diag)[None, :] + scores)
    cost_im = jnp.maximum(0.0, (margin - diag)[:, None] + scores)
    eye = jnp.eye(scores.shape[0], dtype=bool)
    cost_s = jnp.where(eye, 0.0, cost_s)
    cost_im = jnp.where(eye, 0.0, cost_im)
    return jnp.sum(cost_s) + jnp.sum(cost_im)


def _normed(key, shape):
    x = jax.random.normal(key, shape, jnp.float32)
    return x / jnp.linalg.norm(x, axis=1, keepdims=True)


if __name__ == "__main__":
    key = jax.random.PRNGKey(0)
    k1, k2, k3, k4, k5, k6 = jax.random.split(key, 6)

    # 1) Small case, exact f32 MXU path (single full block, grid (1,1)).
    n, d = 8, 32
    im = _normed(k1, (n, d))
    s = _normed(k2, (n, d))
    fn_f32 = jax.jit(functools.partial(pairwise_ranking_loss, margin=1.0,
                                       matmul_dtype=jnp.float32))
    loss = jax.block_until_ready(fn_f32(im, s))
    ref = pairwise_ranking_loss_ref(im, s, 1.0)
    assert bool(jnp.isfinite(loss))
    assert bool(jnp.allclose(loss, ref, rtol=1e-5, atol=1e-5)), (loss, ref)

    # 2) Resident-s path, bf16 operands, ragged row blocks (grid (2, 1)).
    n2, d2 = 1000, 128
    im2 = _normed(k3, (n2, d2))
    s2 = _normed(k4, (n2, d2))
    fn_bf16 = jax.jit(functools.partial(pairwise_ranking_loss, margin=1.0))
    loss2 = jax.block_until_ready(fn_bf16(im2, s2))
    ref2 = pairwise_ranking_loss_ref(im2, s2, 1.0)
    rel2 = jnp.abs(loss2 - ref2) / jnp.maximum(jnp.abs(ref2), 1.0)
    assert bool(rel2 < 5e-3), (loss2, ref2)

    # 3) Tiled 2-D fallback path (residency disabled), f32 exactness check,
    #    ragged rows + cols (grid (3, 3)).
    n3, d3 = 640, 96
    im3 = _normed(k5, (n3, d3))
    s3 = _normed(k6, (n3, d3))
    fn_tiled_f32 = jax.jit(functools.partial(
        pairwise_ranking_loss, margin=1.0, block=256,
        matmul_dtype=jnp.float32, max_resident_n=0))
    loss3 = jax.block_until_ready(fn_tiled_f32(im3, s3))
    ref3 = pairwise_ranking_loss_ref(im3, s3, 1.0)
    rel3 = jnp.abs(loss3 - ref3) / jnp.maximum(jnp.abs(ref3), 1.0)
    assert bool(rel3 < 1e-5), (loss3, ref3)

    # 4) Tiled 2-D fallback path with bf16 operands.
    fn_tiled_bf16 = jax.jit(functools.partial(
        pairwise_ranking_loss, margin=1.0, block=256, max_resident_n=0))
    loss4 = jax.block_until_ready(fn_tiled_bf16(im3, s3))
    rel4 = jnp.abs(loss4 - ref3) / jnp.maximum(jnp.abs(ref3), 1.0)
    assert bool(rel4 < 5e-3), (loss4, ref3)

    print("KERNEL_OK")
</pallas_src>

<mosaic_0001>
module attributes {stable_mosaic.version = 11 : i64} {
  func.func @_loss_kernel(%arg0: i32, %arg1: i32, %arg2: memref<8x32xf32, #tpu.memory_space<vmem>>, %arg3: memref<8x32xf32, #tpu.memory_space<vmem>>, %arg4: memref<1x8xf32, #tpu.memory_space<vmem>>, %arg5: memref<8x1xf32, #tpu.memory_space<vmem>>, %arg6: memref<1x8x128xf32, #tpu.memory_space<vmem>>) attributes {dimension_semantics = [#tpu.dimension_semantics<parallel>, #tpu.dimension_semantics<arbitrary>], iteration_bounds = array<i64: 1, 1>, scalar_prefetch = 0 : i64, scratch_operands = 0 : i64, tpu.core_type = #tpu.core_type<tc>, window_params = [{transform_indices = @transform_0, window_bounds = array<i64: 8, 32>}, {transform_indices = @transform_1, window_bounds = array<i64: 8, 32>}, {transform_indices = @transform_2, window_bounds = array<i64: 1, 8>}, {transform_indices = @transform_3, window_bounds = array<i64: 8, 1>}, {transform_indices = @transform_4, window_bounds = array<i64: 1, 8, 128>}]} {
    %c0_i32 = arith.constant 0 : i32
    %0 = arith.cmpi eq, %arg1, %c0_i32 : i32
    %1 = arith.extui %0 : i1 to i32
    %c0_i32_0 = arith.constant 0 : i32
    %2 = arith.cmpi ne, %1, %c0_i32_0 : i32
    scf.if %2 {
      %cst_22 = arith.constant 0.000000e+00 : f32
      %43 = vector.broadcast %cst_22 : f32 to vector<1x8x128xf32>
      %c0_23 = arith.constant 0 : index
      %c0_24 = arith.constant 0 : index
      %c0_25 = arith.constant 0 : index
      %44 = vector.load %arg6[%c0_23, %c0_24, %c0_25] : memref<1x8x128xf32, #tpu.memory_space<vmem>>, vector<1x8x128xf32>
      tpu.vector_store %arg6[%c0_23, %c0_24, %c0_25], %43 {strides = array<i32>} : memref<1x8x128xf32, #tpu.memory_space<vmem>>, vector<1x8x128xf32>,
    } else {
    }
    %c0 = arith.constant 0 : index
    %c0_1 = arith.constant 0 : index
    %3 = vector.load %arg2[%c0, %c0_1] : memref<8x32xf32, #tpu.memory_space<vmem>>, vector<8x32xf32>
    %c0_2 = arith.constant 0 : index
    %c0_3 = arith.constant 0 : index
    %4 = vector.load %arg3[%c0_2, %c0_3] : memref<8x32xf32, #tpu.memory_space<vmem>>, vector<8x32xf32>
    %cst = arith.constant dense<0.000000e+00> : vector<8x8xf32>
    %5 = tpu.matmul %3, %4, %cst {dimension_numbers = #tpu.dot_dimension_numbers<[1], [1], [0], [0], [0, 0, 1, 0], [], []>} : vector<8x32xf32>, vector<8x32xf32>, vector<8x8xf32> -> vector<8x8xf32>
    %c0_4 = arith.constant 0 : index
    %c0_5 = arith.constant 0 : index
    %6 = vector.load %arg4[%c0_4, %c0_5] : memref<1x8xf32, #tpu.memory_space<vmem>>, vector<1x8xf32>
    %cst_6 = arith.constant 1.000000e+00 : f32
    %7 = vector.broadcast %cst_6 : f32 to vector<1x8xf32>
    %8 = arith.subf %7, %6 : vector<1x8xf32>
    %9 = vector.broadcast %8 : vector<1x8xf32> to vector<8x8xf32>
    %10 = arith.addf %9, %5 : vector<8x8xf32>
    %cst_7 = arith.constant 0.000000e+00 : f32
    %11 = vector.broadcast %cst_7 : f32 to vector<8x8xf32>
    %12 = arith.maximumf %11, %10 : vector<8x8xf32>
    %c0_8 = arith.constant 0 : index
    %c0_9 = arith.constant 0 : index
    %13 = vector.load %arg5[%c0_8, %c0_9] : memref<8x1xf32, #tpu.memory_space<vmem>>, vector<8x1xf32>
    %cst_10 = arith.constant 1.000000e+00 : f32
    %14 = vector.broadcast %cst_10 : f32 to vector<8x1xf32>
    %15 = arith.subf %14, %13 : vector<8x1xf32>
    %16 = vector.broadcast %15 : vector<8x1xf32> to vector<8x8xf32>
    %17 = arith.addf %16, %5 : vector<8x8xf32>
    %cst_11 = arith.constant 0.000000e+00 : f32
    %18 = vector.broadcast %cst_11 : f32 to vector<8x8xf32>
    %19 = arith.maximumf %18, %17 : vector<8x8xf32>
    %20 = arith.addf %12, %19 : vector<8x8xf32>
    %c8_i32 = arith.constant 8 : i32
    %21 = arith.muli %arg0, %c8_i32 : i32
    %22 = tpu.iota {dimensions = array<i32: 0>} : vector<8x1xi32>
    %23 = vector.broadcast %21 : i32 to vector<8x1xi32>
    %24 = arith.addi %23, %22 : vector<8x1xi32>
    %c8_i32_12 = arith.constant 8 : i32
    %25 = arith.muli %arg1, %c8_i32_12 : i32
    %26 = tpu.iota {dimensions = array<i32: 1>} : vector<1x8xi32>
    %27 = vector.broadcast %25 : i32 to vector<1x8xi32>
    %28 = arith.addi %27, %26 : vector<1x8xi32>
    %29 = vector.broadcast %24 : vector<8x1xi32> to vector<8x8xi32>
    %30 = vector.broadcast %28 : vector<1x8xi32> to vector<8x8xi32>
    %31 = arith.cmpi ne, %29, %30 : vector<8x8xi32>
    %cst_13 = arith.constant 0.000000e+00 : f32
    %32 = vector.broadcast %cst_13 : f32 to vector<8x8xf32>
    %33 = arith.select %31, %20, %32 : vector<8x8xi1>, vector<8x8xf32>
    %cst_14 = arith.constant dense<0.000000e+00> : vector<8xf32>
    %34 = vector.multi_reduction <add>, %33, %cst_14 [1] : vector<8x8xf32> to vector<8xf32>
    %35 = vector.shape_cast %34 : vector<8xf32> to vector<8x1xf32>
    %cst_15 = arith.constant dense<0.000000e+00> : vector<1xf32>
    %36 = vector.multi_reduction <add>, %35, %cst_15 [0] : vector<8x1xf32> to vector<1xf32>
    %37 = vector.shape_cast %36 : vector<1xf32> to vector<1x1xf32>
    %c0_16 = arith.constant 0 : index
    %c0_17 = arith.constant 0 : index
    %c0_18 = arith.constant 0 : index
    %38 = vector.load %arg6[%c0_16, %c0_17, %c0_18] : memref<1x8x128xf32, #tpu.memory_space<vmem>>, vector<1x8x128xf32>
    %39 = vector.shape_cast %37 : vector<1x1xf32> to vector<1x1x1xf32>
    %40 = vector.broadcast %39 : vector<1x1x1xf32> to vector<1x8x128xf32>
    %41 = arith.addf %38, %40 : vector<1x8x128xf32>
    %c0_19 = arith.constant 0 : index
    %c0_20 = arith.constant 0 : index
    %c0_21 = arith.constant 0 : index
    %42 = vector.load %arg6[%c0_19, %c0_20, %c0_21] : memref<1x8x128xf32, #tpu.memory_space<vmem>>, vector<1x8x128xf32>
    tpu.vector_store %arg6[%c0_19, %c0_20, %c0_21], %41 {strides = array<i32>} : memref<1x8x128xf32, #tpu.memory_space<vmem>>, vector<1x8x128xf32>,
    return
  }
  func.func @transform_0(%arg0: i32, %arg1: i32) -> (i32, i32) {
    %c0_i32 = arith.constant 0 : i32
    %c0_i32_0 = arith.constant 0 : i32
    return %arg0, %c0_i32 : i32, i32
  }
  func.func @transform_1(%arg0: i32, %arg1: i32) -> (i32, i32) {
    %c0_i32 = arith.constant 0 : i32
    %c0_i32_0 = arith.constant 0 : i32
    return %arg1, %c0_i32 : i32, i32
  }
  func.func @transform_2(%arg0: i32, %arg1: i32) -> (i32, i32) {
    %c0_i32 = arith.constant 0 : i32
    %c0_i32_0 = arith.constant 0 : i32
    return %c0_i32, %arg1 : i32, i32
  }
  func.func @transform_3(%arg0: i32, %arg1: i32) -> (i32, i32) {
    %c0_i32 = arith.constant 0 : i32
    %c0_i32_0 = arith.constant 0 : i32
    return %arg0, %c0_i32 : i32, i32
  }
  func.func @transform_4(%arg0: i32, %arg1: i32) -> (i32, i32, i32) {
    %c0_i32 = arith.constant 0 : i32
    %c0_i32_0 = arith.constant 0 : i32
    %c0_i32_1 = arith.constant 0 : i32
    return %arg0, %c0_i32, %c0_i32_0 : i32, i32, i32
  }
}

</mosaic_0001>

<bundles_post_ra>
// kernel: pairwise_ranking_loss.1
= control target key start
LH: loop header
LB: loop body
LE: loop exit
PB: predicated region body
PF: predicated region fallthrough
CT: control target
= control target key end

     0   :  { %vm24_vm0 = vcmask 261120   ;;  %v163_v0 = vmov 0.0   ;;  %vm164_vm1 = vmmov 0   ;;  %v165_v4 = vmov 0   ;;  %s206_s1 = inlined_call_operand.vmem [shape: f32[8,32], index: 1, kind: input, shape index: {}]   ;;  %s207_s0 = inlined_call_operand.vmem [shape: f32[8,32], index: 0, kind: input, shape index: {}]   ;;  %s208_s3 = inlined_call_operand.vmem [shape: f32[8,1], index: 3, kind: input, shape index: {}]   ;;  %s209_s2 = inlined_call_operand.vmem [shape: f32[1,8], index: 2, kind: input, shape index: {}]   ;;  %s210_s4 = inlined_call_operand.vmem [shape: f32[1,8,128], index: 4, kind: output, shape index: {}]  }
   0x1   :  { %154 = vmatprep.subr.mxu0 %v163_v0  ;;  %v23_v1 = vld [vmem:[%s206_s1] sm:$0xff]  ;;  %156 = vmatprep.mubr.msk.f32.mxu0 %vm164_vm1, %v163_v0  ;;  %v104_v6 = vlaneseq  ;;  %vm133_vm3 = vcmask 64512  }
   0x2   :  { %v111_v2 = vld [vmem:[%s208_s3] sm:$0xff]  ;;  %155 = vmatpush3.xpose.msk.msra.mxu0 %vm24_vm0, %v23_v1  ;;  %162 = vset.pattern.permute.xlu0 %v165_v4 }
   0x3   :  { %v22_v3 = vld [vmem:[%s207_s0] sm:$0xff]  ;;  %v112_v5 = vsub.f32 1.0, %v111_v2  ;;  %v105_v7 = vshrl.u32 %v104_v6, 7  ;;  %v128_v14 = vand.u32 127, %v104_v6 }
   0x4   :  { %v101_v8 = vld [vmem:[%s209_s2] sm:$0x1] }
   0x5   :  { %115 = vperm.xlu0 %162, %v112_v5   ;;  %157 = vmatmul.mubr.msk.f32.vlgmr.msra.gmra.mrb[0].mxu0 %vm24_vm0, %v22_v3  ;;  %v102_v9 = vsub.f32 1.0, %v101_v8  ;;  %v106_v10 = vsub.s32 0, %v105_v7  ;;  %vm131_vm2 = vcmp.ne.s32.totalorder %v105_v7, %v128_v14 }
   0x7   :  { %v107_v11 = vrot.slane %v102_v9, %v106_v10 }
  0x84   :  { %v116_v12 = vpop.permute.xlu0 %115 }
  0xd8   :  { %v97_v13 = vpop.f32.mrb[0].mxu0 }
  0xd9   :  { %v109_v15 = vadd.f32 %v107_v11, %v97_v13  ;;  %v118_v16 = vadd.f32 %v116_v12, %v97_v13  ;;  %v158_v17 = vpop.f32.mrb[1].mxu0 }
  0xdb   :  { %v110_v18 = vmax.f32 %v109_v15, 0.0  ;;  %v119_v19 = vmax.f32 %v118_v16, 0.0 }
  0xdd   :  { %v120_v20 = vadd.f32 %v119_v19, %v110_v18 }
  0xdf   :  { %v132_v21 = vsel %vm131_vm2, %v120_v20, 0.0 }
  0xe0   :  { %v134_v22 = vsel %vm133_vm3, %v132_v21, 0.0 }
  0xe1   :  { %135 = vadd.xlane.f32.xlu0 %v134_v22 }
 0x16e   :  { %v136_v23 = vpop.xlane.xlu0 %135 }
 0x16f   :  { %v137_v24 = vrot.slane %v136_v23, 4 }
 0x171   :  { %v138_v25 = vadd.f32 %v137_v24, %v136_v23 }
 0x173   :  { %v139_v26 = vrot.slane %v138_v25, 2 }
 0x175   :  { %v140_v27 = vadd.f32 %v139_v26, %v138_v25 }
 0x177   :  { %v141_v28 = vrot.slane %v140_v27, 1 }
 0x179   :  { %v142_v29 = vadd.f32 %v141_v28, %v140_v27 }
 0x17b   :  { %145 = vst [vmem:[%s210_s4] sm:$0xff] %v142_v29 }

</bundles_post_ra>
